<compile_context>
chip_gen: v5e
topology: v5e:2x2
jax: 0.10.0
libtpu: 0.0.40
codegen_flags: <defaults>
</compile_context>

<pallas_src>
import jax
import jax.numpy as jnp
import numpy as np
from jax.experimental import pallas as pl
from jax.experimental.pallas import tpu as pltpu


def _round_up(x, m):
    return (x + m - 1) // m * m


def _fused_kernel(xq_ref, w_ref, b_ref, o_ref):
    # xq_ref: (4, C1, tm)  quadrant-stacked input pixels (pixels on lanes)
    # w_ref : (C2, C1)     conv weight with BN scale and 0.25 pool factor folded
    # b_ref : (C2, 1)      folded bias (f32)
    # o_ref : (C2, tm)     pooled output block (pixels on lanes -> dense stores)
    w = w_ref[...]
    b = b_ref[...]
    acc = None
    for q in range(4):                      # static unroll over the 2x2 window
        y = jnp.dot(w, xq_ref[q], preferred_element_type=jnp.float32)
        y = jnp.maximum(y + b, 0.0)         # conv+BN+ReLU per pooling tap
        acc = y if acc is None else acc + y
    o_ref[...] = acc.astype(o_ref.dtype)    # 0.25 avg factor already folded in


def downsample_pool_layer(x_nchw, conv_w, conv_b, bn_gamma, bn_beta, bn_mean,
                          bn_var, eps=1e-5, compute_dtype=jnp.bfloat16,
                          tm=None):
    N, C1, H, W = x_nchw.shape
    C2 = conv_w.shape[0]
    assert H % 2 == 0 and W % 2 == 0, "AvgPool2d(2,2) needs even spatial dims"
    Ho, Wo = H // 2, W // 2
    M = N * Ho * Wo

    # Fold Conv2d bias + BatchNorm2d(eval) + the 1/4 avg-pool factor into one
    # per-channel weight/bias (valid because relu(z)/4 == relu(z/4)).
    scale = bn_gamma / jnp.sqrt(bn_var + eps)                       # (C2,)
    w_eff = conv_w.reshape(C2, C1) * (0.25 * scale)[:, None]        # (C2, C1)
    b_eff = 0.25 * (scale * (conv_b - bn_mean) + bn_beta)           # (C2,)

    # Single layout pass: NCHW -> (quadrant, channel, pixel).  The reshapes are
    # zero-copy; one XLA transpose materializes the quadrant-stacked array
    # directly (no separate strided quadrant copies).
    xq = x_nchw.reshape(N, C1, Ho, 2, Wo, 2)
    xq = jnp.transpose(xq, (3, 5, 1, 0, 2, 4))       # (2, 2, C1, N, Ho, Wo)
    xq = xq.reshape(4, C1, M).astype(compute_dtype)

    w2d = w_eff.astype(compute_dtype)                # bf16 halves HBM reads
    b2d = b_eff.reshape(C2, 1).astype(jnp.float32)

    # Pixel-tile size: biggest multiple of 128 that fits a conservative
    # double-buffered VMEM budget (safe on v5e 16MiB / v6e 32MiB / v7x 32MiB
    # scoped defaults), capped to keep vreg pressure sane.
    if tm is None:
        itemsize = jnp.dtype(compute_dtype).itemsize
        in_col = 4 * _round_up(C1, 8) * itemsize     # sublane-padded input cols
        out_col = _round_up(C2, 8) * 4               # f32 output cols
        per_col = 2 * (in_col + out_col)             # double buffered
        budget = 8 * 1024 * 1024
        tm = int(budget // per_col) // 128 * 128
        tm = max(128, min(2048, tm))
    if M <= tm:
        tm = M                                       # full-dim block is always legal
    grid = (pl.cdiv(M, tm),)                         # partial last block is masked

    out_flat = pl.pallas_call(
        _fused_kernel,
        out_shape=jax.ShapeDtypeStruct((C2, M), jnp.float32),
        grid_spec=pltpu.PrefetchScalarGridSpec(
            num_scalar_prefetch=0,
            grid=grid,
            in_specs=[
                pl.BlockSpec((4, C1, tm), lambda i: (0, 0, i)),
                # constant-index blocks: fetched once, stay VMEM-resident
                pl.BlockSpec((C2, C1), lambda i: (0, 0)),
                pl.BlockSpec((C2, 1), lambda i: (0, 0)),
            ],
            out_specs=pl.BlockSpec((C2, tm), lambda i: (0, i)),
        ),
        compiler_params=pltpu.CompilerParams(
            dimension_semantics=("parallel",),       # megacore-shardable on v7x
            vmem_limit_bytes=32 * 1024 * 1024),
    )(xq, w2d, b2d)

    out = out_flat.reshape(C2, N, Ho, Wo)
    return jnp.transpose(out, (1, 0, 2, 3))          # back to NCHW


def _reference(x_nchw, conv_w, conv_b, bn_gamma, bn_beta, bn_mean, bn_var,
               eps=1e-5):
    # plain-JAX f32 reference: pool(relu(bn(conv1x1(x))))
    N, C1, H, W = x_nchw.shape
    C2 = conv_w.shape[0]
    x = jnp.transpose(x_nchw, (0, 2, 3, 1)).astype(jnp.float32)   # NHWC
    y = jnp.einsum('nhwc,oc->nhwo', x, conv_w.reshape(C2, C1)) + conv_b
    y = (y - bn_mean) / jnp.sqrt(bn_var + eps) * bn_gamma + bn_beta
    y = jnp.maximum(y, 0.0)
    y = y.reshape(N, H // 2, 2, W // 2, 2, C2).mean(axis=(2, 4))
    return jnp.transpose(y, (0, 3, 1, 2))


if __name__ == "__main__":
    key = jax.random.PRNGKey(0)
    kx, kw, kb, kg, kbt, km, kv = jax.random.split(key, 7)

    N, C1, C2, H, W = 2, 4, 8, 16, 16
    x = jax.random.normal(kx, (N, C1, H, W), dtype=jnp.float32)

    # deterministic synthetic parameters (Conv2d 1x1 + BatchNorm2d eval stats)
    conv_w = jax.random.normal(kw, (C2, C1, 1, 1), dtype=jnp.float32) * 0.2
    conv_b = jax.random.normal(kb, (C2,), dtype=jnp.float32) * 0.1
    bn_gamma = 1.0 + 0.1 * jax.random.normal(kg, (C2,), dtype=jnp.float32)
    bn_beta = 0.1 * jax.random.normal(kbt, (C2,), dtype=jnp.float32)
    bn_mean = 0.05 * jax.random.normal(km, (C2,), dtype=jnp.float32)
    bn_var = jnp.abs(jax.random.normal(kv, (C2,), dtype=jnp.float32)) + 0.5

    ref = _reference(x, conv_w, conv_b, bn_gamma, bn_beta, bn_mean, bn_var)

    # f32 compute path: tight check against the reference
    out_f32 = downsample_pool_layer(x, conv_w, conv_b, bn_gamma, bn_beta,
                                    bn_mean, bn_var,
                                    compute_dtype=jnp.float32)
    out_f32 = jax.block_until_ready(out_f32)
    assert out_f32.shape == (N, C2, H // 2, W // 2), out_f32.shape
    np.testing.assert_allclose(np.asarray(out_f32), np.asarray(ref),
                               rtol=1e-4, atol=1e-4)

    # default bf16-input path (halves HBM read bytes): relaxed tolerance
    out_bf16 = downsample_pool_layer(x, conv_w, conv_b, bn_gamma, bn_beta,
                                     bn_mean, bn_var)
    out_bf16 = jax.block_until_ready(out_bf16)
    np.testing.assert_allclose(np.asarray(out_bf16), np.asarray(ref),
                               rtol=5e-2, atol=5e-2)

    print("KERNEL_OK")
</pallas_src>

<mosaic_0001>
module attributes {stable_mosaic.version = 11 : i64} {
  func.func @_fused_kernel(%arg0: i32, %arg1: memref<4x4x128xf32, #tpu.memory_space<vmem>>, %arg2: memref<8x4xf32, #tpu.memory_space<vmem>>, %arg3: memref<8x1xf32, #tpu.memory_space<vmem>>, %arg4: memref<8x128xf32, #tpu.memory_space<vmem>>) attributes {dimension_semantics = [#tpu.dimension_semantics<parallel>], iteration_bounds = array<i64: 1>, scalar_prefetch = 0 : i64, scratch_operands = 0 : i64, tpu.core_type = #tpu.core_type<tc>, window_params = [{transform_indices = @transform_0, window_bounds = array<i64: 4, 4, 128>}, {pipeline_mode = #tpu.pipeline_mode<synchronous>, transform_indices = @transform_1, window_bounds = array<i64: 8, 4>}, {pipeline_mode = #tpu.pipeline_mode<synchronous>, transform_indices = @transform_2, window_bounds = array<i64: 8, 1>}, {transform_indices = @transform_3, window_bounds = array<i64: 8, 128>}]} {
    %c0 = arith.constant 0 : index
    %c0_0 = arith.constant 0 : index
    %0 = vector.load %arg2[%c0, %c0_0] : memref<8x4xf32, #tpu.memory_space<vmem>>, vector<8x4xf32>
    %c0_1 = arith.constant 0 : index
    %c0_2 = arith.constant 0 : index
    %1 = vector.load %arg3[%c0_1, %c0_2] : memref<8x1xf32, #tpu.memory_space<vmem>>, vector<8x1xf32>
    %c0_3 = arith.constant 0 : index
    %c0_4 = arith.constant 0 : index
    %c0_5 = arith.constant 0 : index
    %2 = vector.load %arg1[%c0_3, %c0_4, %c0_5] : memref<4x4x128xf32, #tpu.memory_space<vmem>>, vector<1x4x128xf32>
    %3 = vector.shape_cast %2 : vector<1x4x128xf32> to vector<4x128xf32>
    %cst = arith.constant dense<0.000000e+00> : vector<8x128xf32>
    %4 = tpu.matmul %0, %3, %cst {dimension_numbers = #tpu.dot_dimension_numbers<[1], [0], [0], [1], [0, 0, 1, 1], [], []>} : vector<8x4xf32>, vector<4x128xf32>, vector<8x128xf32> -> vector<8x128xf32>
    %5 = vector.broadcast %1 : vector<8x1xf32> to vector<8x128xf32>
    %6 = arith.addf %4, %5 : vector<8x128xf32>
    %cst_6 = arith.constant 0.000000e+00 : f32
    %7 = vector.broadcast %cst_6 : f32 to vector<8x128xf32>
    %8 = arith.maximumf %6, %7 : vector<8x128xf32>
    %c1 = arith.constant 1 : index
    %c0_7 = arith.constant 0 : index
    %c0_8 = arith.constant 0 : index
    %9 = vector.load %arg1[%c1, %c0_7, %c0_8] : memref<4x4x128xf32, #tpu.memory_space<vmem>>, vector<1x4x128xf32>
    %10 = vector.shape_cast %9 : vector<1x4x128xf32> to vector<4x128xf32>
    %cst_9 = arith.constant dense<0.000000e+00> : vector<8x128xf32>
    %11 = tpu.matmul %0, %10, %cst_9 {dimension_numbers = #tpu.dot_dimension_numbers<[1], [0], [0], [1], [0, 0, 1, 1], [], []>} : vector<8x4xf32>, vector<4x128xf32>, vector<8x128xf32> -> vector<8x128xf32>
    %12 = vector.broadcast %1 : vector<8x1xf32> to vector<8x128xf32>
    %13 = arith.addf %11, %12 : vector<8x128xf32>
    %cst_10 = arith.constant 0.000000e+00 : f32
    %14 = vector.broadcast %cst_10 : f32 to vector<8x128xf32>
    %15 = arith.maximumf %13, %14 : vector<8x128xf32>
    %16 = arith.addf %8, %15 : vector<8x128xf32>
    %c2 = arith.constant 2 : index
    %c0_11 = arith.constant 0 : index
    %c0_12 = arith.constant 0 : index
    %17 = vector.load %arg1[%c2, %c0_11, %c0_12] : memref<4x4x128xf32, #tpu.memory_space<vmem>>, vector<1x4x128xf32>
    %18 = vector.shape_cast %17 : vector<1x4x128xf32> to vector<4x128xf32>
    %cst_13 = arith.constant dense<0.000000e+00> : vector<8x128xf32>
    %19 = tpu.matmul %0, %18, %cst_13 {dimension_numbers = #tpu.dot_dimension_numbers<[1], [0], [0], [1], [0, 0, 1, 1], [], []>} : vector<8x4xf32>, vector<4x128xf32>, vector<8x128xf32> -> vector<8x128xf32>
    %20 = vector.broadcast %1 : vector<8x1xf32> to vector<8x128xf32>
    %21 = arith.addf %19, %20 : vector<8x128xf32>
    %cst_14 = arith.constant 0.000000e+00 : f32
    %22 = vector.broadcast %cst_14 : f32 to vector<8x128xf32>
    %23 = arith.maximumf %21, %22 : vector<8x128xf32>
    %24 = arith.addf %16, %23 : vector<8x128xf32>
    %c3 = arith.constant 3 : index
    %c0_15 = arith.constant 0 : index
    %c0_16 = arith.constant 0 : index
    %25 = vector.load %arg1[%c3, %c0_15, %c0_16] : memref<4x4x128xf32, #tpu.memory_space<vmem>>, vector<1x4x128xf32>
    %26 = vector.shape_cast %25 : vector<1x4x128xf32> to vector<4x128xf32>
    %cst_17 = arith.constant dense<0.000000e+00> : vector<8x128xf32>
    %27 = tpu.matmul %0, %26, %cst_17 {dimension_numbers = #tpu.dot_dimension_numbers<[1], [0], [0], [1], [0, 0, 1, 1], [], []>} : vector<8x4xf32>, vector<4x128xf32>, vector<8x128xf32> -> vector<8x128xf32>
    %28 = vector.broadcast %1 : vector<8x1xf32> to vector<8x128xf32>
    %29 = arith.addf %27, %28 : vector<8x128xf32>
    %cst_18 = arith.constant 0.000000e+00 : f32
    %30 = vector.broadcast %cst_18 : f32 to vector<8x128xf32>
    %31 = arith.maximumf %29, %30 : vector<8x128xf32>
    %32 = arith.addf %24, %31 : vector<8x128xf32>
    %c0_19 = arith.constant 0 : index
    %c0_20 = arith.constant 0 : index
    %33 = vector.load %arg4[%c0_19, %c0_20] : memref<8x128xf32, #tpu.memory_space<vmem>>, vector<8x128xf32>
    tpu.vector_store %arg4[%c0_19, %c0_20], %32 {strides = array<i32>} : memref<8x128xf32, #tpu.memory_space<vmem>>, vector<8x128xf32>,
    return
  }
  func.func @transform_0(%arg0: i32) -> (i32, i32, i32) {
    %c0_i32 = arith.constant 0 : i32
    %c0_i32_0 = arith.constant 0 : i32
    %c0_i32_1 = arith.constant 0 : i32
    return %c0_i32, %c0_i32_0, %arg0 : i32, i32, i32
  }
  func.func @transform_1(%arg0: i32) -> (i32, i32) {
    %c0_i32 = arith.constant 0 : i32
    %c0_i32_0 = arith.constant 0 : i32
    %c0_i32_1 = arith.constant 0 : i32
    return %c0_i32, %c0_i32_0 : i32, i32
  }
  func.func @transform_2(%arg0: i32) -> (i32, i32) {
    %c0_i32 = arith.constant 0 : i32
    %c0_i32_0 = arith.constant 0 : i32
    %c0_i32_1 = arith.constant 0 : i32
    return %c0_i32, %c0_i32_0 : i32, i32
  }
  func.func @transform_3(%arg0: i32) -> (i32, i32) {
    %c0_i32 = arith.constant 0 : i32
    %c0_i32_0 = arith.constant 0 : i32
    return %c0_i32, %arg0 : i32, i32
  }
}

</mosaic_0001>

<bundles_post_ra>
// kernel: tpu_custom_call.1
= control target key start
LH: loop header
LB: loop body
LE: loop exit
PB: predicated region body
PF: predicated region fallthrough
CT: control target
= control target key end

     0   :  { %vm27_vm0 = vcmask 1043456   ;;  %vm23_vm1 = vcmask 31744   ;;  %s233_s0 = inlined_call_operand.vmem [shape: f32[4,4,128], index: 0, kind: input, shape index: {}]   ;;  %s234_s1 = inlined_call_operand.vmem [shape: f32[8,4], index: 1, kind: input, shape index: {}]   ;;  %s235_s2 = inlined_call_operand.vmem [shape: f32[8,1], index: 2, kind: input, shape index: {}]   ;;  %s236_s3 = inlined_call_operand.hbm [shape: f32[8,128], index: 3, kind: output, shape index: {}]  }
   0x1   :  { %v155_v0 = vld [vmem:[%s233_s0 + $0x8] sm:$0xf]  ;;  %v158_v1 = vld [vmem:[%s233_s0 + $0xc] sm:$0xf]  ;;  %v15_v2 = vld [vmem:[%s234_s1] sm:$0xff] }
   0x2   :  { %156 = vmatpush.msk.msra.mxu2 %vm27_vm0, %v155_v0  ;;  %159 = vmatpush.msk.msra.mxu3 %vm27_vm0, %v158_v1  ;;  %v17_v3 = vld [vmem:[%s233_s0] sm:$0xf]  ;;  %v152_v4 = vld [vmem:[%s233_s0 + $0x4] sm:$0xf] }
   0x3   :  { %157 = vmatmul.msk.f32.vlgmr.msra.gmra.mxu2 %vm23_vm1, %v15_v2  ;;  %160 = vmatmul.msk.f32.vlgmr.msra.gmra.mxu3 %vm23_vm1, %v15_v2 }
   0x4   :  { %8 = vsyncpa [#allocation3], 0  ;;  %150 = vmatpush.msk.msra.mxu0 %vm27_vm0, %v17_v3  ;;  %153 = vmatpush.msk.msra.mxu1 %vm27_vm0, %v152_v4  ;;  %v16_v5 = vld [vmem:[%s235_s2] sm:$0xff]  ;;  %v190_v6 = vmov 0   ;;  %s191_s0 = smov [#allocation2]   ;;  %s141_s25 = sshll.u32 %s236_s3, 4  ;;  %s142_s25 = int_to_ptr.hbm [resolvable:$true] %s141_s25 }
   0x5   :  { %151 = vmatmul.msk.f32.vlgmr.msra.gmra.mxu0 %vm23_vm1, %v15_v2  ;;  %154 = vmatmul.msk.f32.vlgmr.msra.gmra.mxu1 %vm23_vm1, %v15_v2  ;;  %s139_s1 = sshll.u32 %s191_s0, 4  ;;  %s140_s1 = int_to_ptr.vmem [resolvable:$true] %s139_s1 }
   0x6   :  { %163 = vset.pattern.permute.xlu0 %v190_v6 }
   0x7   :  { %20 = vperm.xlu0 %163, %v16_v5  }
  0x79   :  { %v21_v7 = vpop.permute.xlu0 %20 }
  0x82   :  { %v48_v8 = vpop.f32.mrf.mxu0  ;;  %v74_v9 = vpop.f32.mrf.mxu1 }
  0x83   :  { %v49_v10 = vadd.f32 %v48_v8, %v21_v7  ;;  %v75_v11 = vadd.f32 %v74_v9, %v21_v7 }
  0x85   :  { %v51_v12 = vmax.f32 %v49_v10, 0.0  ;;  %v77_v13 = vmax.f32 %v75_v11, 0.0 }
  0x86   :  { %v101_v14 = vpop.f32.mrf.mxu2  ;;  %v128_v15 = vpop.f32.mrf.mxu3 }
  0x87   :  { %v78_v16 = vadd.f32 %v77_v13, %v51_v12  ;;  %v102_v17 = vadd.f32 %v101_v14, %v21_v7  ;;  %v129_v18 = vadd.f32 %v128_v15, %v21_v7 }
  0x89   :  { %v104_v19 = vmax.f32 %v102_v17, 0.0  ;;  %v131_v21 = vmax.f32 %v129_v18, 0.0 }
  0x8b   :  { %v105_v20 = vadd.f32 %v104_v19, %v78_v16 }
  0x8d   :  { %v132_v22 = vadd.f32 %v131_v21, %v105_v20 }
  0x8f   :  { %133 = vst [vmem:[#allocation2] sm:$0xff] %v132_v22 }
  0x90   :  { %144 = dma.vmem_to_hbm [thread:$0]  %s140_s1, 128, %s142_s25, [#allocation3]  }
  0x91   :  { %188 = dma.done.wait [#allocation3], 128  }
  0x92   :  { %189 = vsyncadd [#allocation3], 4294967168 }
  0x93   :  { %149 = vsyncpa [#allocation3], 1 }

</bundles_post_ra>
